<compile_context>
chip_gen: v7x
topology: tpu7x:2x2x1
jax: 0.10.0
libtpu: 0.0.40
codegen_flags: <defaults>
</compile_context>

<pallas_src>
import functools
import math

import numpy as np
import jax
import jax.numpy as jnp
from jax import lax
from jax.experimental import pallas as pl
from jax.experimental.pallas import tpu as pltpu


_MXU_BF16 = False   # TODO(synk): enable on v6e/v7x (2x MXU, half attn traffic)
                    # once tolerance is relaxed -- bf16 operands shift edge
                    # scores near the top-k threshold.
_MAX_DST_TILE = 256            # dst-column tile width at large N (mult of 128)
_VMEM_FLOOR = 32 * 1024 * 1024
_VMEM_CAP = 64 * 1024 * 1024   # <= physical VMEM on v5e/v6e/v7x


def _round_up(a, b):
    return (a + b - 1) // b * b


def _mxu(x):
    return x.astype(jnp.bfloat16) if _MXU_BF16 else x


def _pad_and_tile(n):
    """(padded node count, dst-tile width) satisfying the (8,128) block rule."""
    if n <= _MAX_DST_TILE:
        npad = _round_up(n, 8)
        return npad, npad                      # single full-width tile
    return _round_up(n, _MAX_DST_TILE), _MAX_DST_TILE


def _vmem_limit(block_bytes, temp_bytes):
    est = 3 * (2 * block_bytes + temp_bytes)   # 2x for double buffering
    return int(max(_VMEM_FLOOR, min(_VMEM_CAP, est)))


def _ls(num_edges):
    """l_s = int(0.713*E), guarded against l_s == 0 for tiny graphs."""
    return min(max(int(0.713 * num_edges), 1), num_edges)


# ----------------------------- Pallas kernels -------------------------------

def _matmul_kernel(x_ref, w_ref, o_ref, acc_ref):
    @pl.when(pl.program_id(2) == 0)
    def _():
        acc_ref[...] = jnp.zeros_like(acc_ref)

    acc_ref[...] += jnp.dot(_mxu(x_ref[...]), _mxu(w_ref[...]),
                            preferred_element_type=jnp.float32)

    @pl.when(pl.program_id(2) == pl.num_programs(2) - 1)
    def _():
        o_ref[...] = acc_ref[...].astype(o_ref.dtype)


def pallas_matmul(x, w, *, tm=128, tn=256, tk=256):
    """Tiled x @ w with f32 VMEM accumulator (K axis last, 'arbitrary').

    Non-tile-multiple shapes are zero-padded (cdiv grid) and sliced back, so
    arbitrary node counts / feature dims run instead of hitting asserts."""
    M, K = x.shape
    K2, N = w.shape
    assert K == K2
    # A block dim on the last two axes must be (8,128)-aligned or span the
    # full (padded) dim.
    tm = M if M <= tm else tm
    tk = K if K <= tk else tk
    tn = N if N <= tn else tn
    Mp, Kp, Np = _round_up(M, tm), _round_up(K, tk), _round_up(N, tn)
    if (Mp, Kp) != (M, K):
        x = jnp.pad(x, ((0, Mp - M), (0, Kp - K)))
    if (Kp, Np) != (K, N):
        w = jnp.pad(w, ((0, Kp - K), (0, Np - N)))
    out = pl.pallas_call(
        _matmul_kernel,
        out_shape=jax.ShapeDtypeStruct((Mp, Np), jnp.float32),
        grid_spec=pltpu.PrefetchScalarGridSpec(
            num_scalar_prefetch=0,
            grid=(Mp // tm, Np // tn, Kp // tk),
            in_specs=[pl.BlockSpec((tm, tk), lambda i, j, k: (i, k)),
                      pl.BlockSpec((tk, tn), lambda i, j, k: (k, j))],
            out_specs=pl.BlockSpec((tm, tn), lambda i, j, k: (i, j)),
            scratch_shapes=[pltpu.VMEM((tm, tn), jnp.float32)]),
        compiler_params=pltpu.CompilerParams(
            dimension_semantics=("parallel", "parallel", "arbitrary")),
    )(x, w)
    return out[:M, :N] if (Mp, Np) != (M, N) else out


def _attn_softmax_kernel(c_ref, q_ref, adj_ref, attn_ref):
    # Grid: (head, dst_tile).
    #   c_ref : (1, Tv, D)  ft_c rows of this head's dst tile
    #   q_ref : (1, Ns, D)  ft_q rows of all sources (grid-resident per head)
    #   adj_ref: (Ns, Tv) int8, adj[u,v] != 0 iff edge u -> v (src -> dst)
    #   attn_ref: (1, Ns, Tv) output
    c = c_ref[0]                                        # (Tv, D)
    q = q_ref[0]                                        # (Ns, D)
    # score[u,v] = (ft_q[u]-ft_c[v]).ft_c[v] = (q c^T)[u,v] - ||c[v]||^2
    qc = lax.dot_general(_mxu(q), _mxu(c), (((1,), (1,)), ((), ())),
                         preferred_element_type=jnp.float32)   # (Ns, Tv)
    cc = jnp.sum(c * c, axis=-1)                               # (Tv,)
    s = qc - cc[None, :]
    # ELU (alpha = 1.0)
    s = jnp.where(s > 0, s, jnp.exp(jnp.minimum(s, 0.0)) - 1.0)
    # integer mask compare (no int->float cast of the Ns x Tv adjacency tile)
    mask = adj_ref[...].astype(jnp.int32) != 0
    s = jnp.where(mask, s, jnp.float32(-1e30))
    # DGL edge_softmax: per destination column, reduce over source axis 0.
    m = jnp.max(s, axis=0, keepdims=True)                      # (1, Tv)
    e = jnp.exp(s - m)            # masked entries underflow to exactly 0
    denom = jnp.sum(e, axis=0, keepdims=True)
    # Reciprocal of the (1,Tv) denominator + broadcast multiply instead of an
    # (Ns,Tv) divide.  Empty destination columns (m == -1e30) forced to 0
    # (reference would produce NaN there -- intended divergence).
    inv = jnp.where(m > jnp.float32(-1e29), pl.reciprocal(denom),
                    jnp.float32(0.0))
    attn_ref[0] = e * inv


def attn_softmax(ft_c, ft_q, adj_i8, tile_dst):
    H, Ns, D = ft_c.shape
    n_dst = Ns // tile_dst
    block_bytes = 4 * (tile_dst * D + Ns * D + Ns * tile_dst) + Ns * tile_dst
    temp_bytes = 5 * Ns * tile_dst * 4
    return pl.pallas_call(
        _attn_softmax_kernel,
        out_shape=jax.ShapeDtypeStruct((H, Ns, Ns), jnp.float32),
        grid_spec=pltpu.PrefetchScalarGridSpec(
            num_scalar_prefetch=0,
            grid=(H, n_dst),
            in_specs=[pl.BlockSpec((1, tile_dst, D), lambda h, i: (h, i, 0)),
                      pl.BlockSpec((1, Ns, D), lambda h, i: (h, 0, 0)),
                      pl.BlockSpec((Ns, tile_dst), lambda h, i: (0, i))],
            out_specs=pl.BlockSpec((1, Ns, tile_dst), lambda h, i: (h, 0, i))),
        compiler_params=pltpu.CompilerParams(
            dimension_semantics=("parallel", "parallel"),
            vmem_limit_bytes=_vmem_limit(block_bytes, temp_bytes)),
    )(ft_c, ft_q, adj_i8)


def _agg_concat_kernel(thd_ref, ratio_ref, attn_ref, ft_src_ref, ft_dst_ref,
                       out_ref):
    # Grid: (dst_tile,).
    #   thd/ratio : (H,) SMEM per-head scalars (threshold, rescale ratio)
    #   attn      : (H, Ns, Tv)    ft_src: (H, Ns, D) (grid-resident)
    #   ft_dst    : (H, Tv, D)     out   : (Tv, H*D + D)
    H = attn_ref.shape[0]
    pieces = []
    ft_sum = jnp.zeros(ft_dst_ref.shape[1:], jnp.float32)
    for h in range(H):         # H is small & static; per-head temps are Ns x Tv
        a = attn_ref[h]                                       # (Ns, Tv)
        a_thr = jnp.where(a < thd_ref[h], jnp.float32(0.0), a)
        # ret[v,:] = sum_u a_thr[u,v] * ft[u,:] (contract axis 0 of both);
        # per-head rescale folded into the small (Tv,D) result, not the NxTv map.
        ret_h = lax.dot_general(_mxu(a_thr), _mxu(ft_src_ref[h]),
                                (((0,), (0,)), ((), ())),
                                preferred_element_type=jnp.float32)
        pieces.append(ret_h * ratio_ref[h])
        ft_sum = ft_sum + ft_dst_ref[h]
    # concat=True tail: mean of ft over heads; single lane-dense store.
    pieces.append(ft_sum * jnp.float32(1.0 / H))
    out_ref[...] = jnp.concatenate(pieces, axis=-1)


def threshold_agg_concat(attn, ft, thd, ratio, tile_dst):
    H, Ns, _ = attn.shape
    D = ft.shape[-1]
    n_dst = Ns // tile_dst
    width = H * D + D
    block_bytes = 4 * (H * Ns * tile_dst + H * Ns * D + H * tile_dst * D
                       + tile_dst * width)
    temp_bytes = 3 * Ns * tile_dst * 4
    return pl.pallas_call(
        _agg_concat_kernel,
        out_shape=jax.ShapeDtypeStruct((Ns, width), jnp.float32),
        grid_spec=pltpu.PrefetchScalarGridSpec(
            num_scalar_prefetch=0,
            grid=(n_dst,),
            in_specs=[
                pl.BlockSpec(memory_space=pltpu.MemorySpace.SMEM),  # thd   (H,)
                pl.BlockSpec(memory_space=pltpu.MemorySpace.SMEM),  # ratio (H,)
                pl.BlockSpec((H, Ns, tile_dst), lambda i: (0, 0, i)),
                pl.BlockSpec((H, Ns, D), lambda i: (0, 0, 0)),
                pl.BlockSpec((H, tile_dst, D), lambda i: (0, i, 0)),
            ],
            out_specs=pl.BlockSpec((tile_dst, width), lambda i: (i, 0))),
        compiler_params=pltpu.CompilerParams(
            dimension_semantics=("parallel",),
            vmem_limit_bytes=_vmem_limit(block_bytes, temp_bytes)),
    )(thd, ratio, attn, ft, ft)


# ------------------------------ forward pass --------------------------------

def init_params(key, in_dim, topo_dim, num_heads, out_dim):
    """Parameter init matching __init__ (fl xavier_normal, fc/fq const 0.01).
    The fused [fl | fc | fq] weight is built ONCE here (hoisted out of
    forward, no per-call HBM copy of the parameters)."""
    HD = num_heads * out_dim
    std = math.sqrt(2.0 / (in_dim + HD))
    wl = jax.random.normal(key, (in_dim, HD), dtype=jnp.float32) * std
    fc = jnp.full((in_dim + topo_dim, HD), 0.01, dtype=jnp.float32)
    fq = jnp.full((in_dim, HD), 0.01, dtype=jnp.float32)
    return {"wl": wl, "fc": fc, "fq": fq,
            "w_fused": jnp.concatenate([wl, fc, fq], axis=1)}


def graph_topo_attention_forward(inputs, params, src, dst, adj_i8,
                                 num_heads, out_dim):
    """Forward of GraphTopoAttention with feat_drop=attn_drop=0, topo=None,
    residual=False, concat=True, last_layer=False."""
    N, _ = inputs.shape
    H, D = num_heads, out_dim
    Npad, tile_dst = _pad_and_tile(N)
    h = inputs                                          # feat_drop = identity
    if Npad != N:
        h = jnp.pad(h, ((0, Npad - N), (0, 0)))
        adj_i8 = jnp.pad(adj_i8, ((0, Npad - N), (0, Npad - N)))

    # Fused fl|fc|fq projection: one tiled Pallas matmul, one HBM read of h.
    proj = pallas_matmul(h, params["w_fused"])          # (Npad, 3*H*D)
    # Cheap O(N*H*D) re-layout to head-major so the attention kernels take
    # clean (1, tile, D) blocks per (head, dst-tile) grid step.
    pt = jnp.transpose(proj.reshape(Npad, 3, H, D), (1, 2, 0, 3))
    ft, ft_c, ft_q = pt[0], pt[1], pt[2]                # (H, Npad, D) each

    # Edge attention + per-destination edge_softmax on a (head, dst-tile) grid.
    attn = attn_softmax(ft_c, ft_q, adj_i8, tile_dst)   # (H, Npad, Npad)

    # torch.topk(largest=False) threshold + rescale scalars in plain JAX glue.
    # TODO(synk): sort/top-k has no clean Pallas TPU equivalent.
    # TODO(synk): emit the (H,E) edge values from the softmax kernel via
    # scalar-prefetched src/dst instead of this XLA gather over attn.
    E = int(src.shape[0])
    l_s = _ls(E)
    a_edges = attn[:, src, dst]                         # (H, E)
    a_sorted = jnp.sort(a_edges, axis=1)
    thd = a_sorted[:, l_s - 1]                          # (H,) l_s-th smallest
    topk_sum = jnp.sum(a_sorted[:, :l_s], axis=1)       # (H,)
    # Per-head sum of surviving attention (== sum of the whole NxN map after
    # thresholding, since off-edge entries are exactly 0).  Guard kept_sum==0
    # (all-below-threshold head) with ratio 1 -- reference would give Inf/NaN.
    kept_sum = jnp.sum(jnp.where(a_edges >= thd[:, None], a_edges, 0.0), axis=1)
    ratio = jnp.where(kept_sum > 0,
                      (kept_sum + topk_sum) / jnp.where(kept_sum > 0,
                                                        kept_sum, 1.0),
                      1.0)

    # Threshold + rescale + aggregate + head-mean + concat, dst-tiled,
    # lane-dense single-store output.
    out = threshold_agg_concat(attn, ft, thd.astype(jnp.float32),
                               ratio.astype(jnp.float32), tile_dst)
    return out[:N] if Npad != N else out


# --------------------------- pure-JAX reference ------------------------------

def reference_forward(inputs, params, src, dst, N, H, D):
    h = inputs
    ft = (h @ params["wl"]).reshape(N, H, D)
    ft_c = (h @ params["fc"]).reshape(N, H, D)
    ft_q = (h @ params["fq"]).reshape(N, H, D)
    c = ft_c[dst]                                          # (E, H, D)
    q = ft_q[src] - c
    a = jnp.sum(q * c, axis=-1)                            # (E, H)
    a = jnp.where(a > 0, a, jnp.exp(jnp.minimum(a, 0.0)) - 1.0)   # ELU
    a_max = jax.ops.segment_max(a, dst, num_segments=N)
    e = jnp.exp(a - a_max[dst])
    denom = jax.ops.segment_sum(e, dst, num_segments=N)
    attn = e / denom[dst]                                  # (E, H)
    E = int(src.shape[0])
    l_s = _ls(E)
    a_sorted = jnp.sort(attn, axis=0)
    thd = a_sorted[l_s - 1]
    topk_sum = a_sorted[:l_s].sum(0)
    a_thr = jnp.where(attn - thd < 0, 0.0, attn)
    s = a_thr.sum(0)
    a_fin = a_thr * ((s + topk_sum) / s)
    msg = ft[src] * a_fin[..., None]                       # (E, H, D)
    ret = jax.ops.segment_sum(msg, dst, num_segments=N)    # (N, H, D)
    return jnp.concatenate([ret.reshape(N, H * D), ft.mean(axis=1)], axis=1)


# ---------------------------------- main -------------------------------------

if __name__ == "__main__":
    N, in_dim, topo_dim, H, D = 16, 32, 0, 4, 8

    key = jax.random.PRNGKey(0)
    k_x, k_w = jax.random.split(key)
    x = jax.random.normal(k_x, (N, in_dim), dtype=jnp.float32)
    params = init_params(k_w, in_dim, topo_dim, H, D)

    # synthetic graph: self-loops + forward ring + backward ring
    src_np = np.concatenate([np.arange(N), np.arange(N), np.arange(N)])
    dst_np = np.concatenate([np.arange(N), (np.arange(N) + 1) % N,
                             (np.arange(N) - 1) % N])
    adj_np = np.zeros((N, N), np.int8)
    adj_np[src_np, dst_np] = 1
    src = jnp.asarray(src_np, dtype=jnp.int32)
    dst = jnp.asarray(dst_np, dtype=jnp.int32)
    adj_i8 = jnp.asarray(adj_np)                           # int8 mask

    out = graph_topo_attention_forward(x, params, src, dst, adj_i8, H, D)
    out = jax.block_until_ready(out)

    ref = reference_forward(x, params, src, dst, N, H, D)
    np.testing.assert_allclose(np.asarray(out), np.asarray(ref),
                               rtol=2e-4, atol=2e-5)
    assert out.shape == (N, H * D + D)
    print("KERNEL_OK")
</pallas_src>

<mosaic_0001>
module attributes {stable_mosaic.version = 11 : i64} {
  func.func @_matmul_kernel(%arg0: i32, %arg1: i32, %arg2: i32, %arg3: memref<16x32xf32, #tpu.memory_space<vmem>>, %arg4: memref<32x96xf32, #tpu.memory_space<vmem>>, %arg5: memref<16x96xf32, #tpu.memory_space<vmem>>, %arg6: memref<16x96xf32, #tpu.memory_space<vmem>>) attributes {dimension_semantics = [#tpu.dimension_semantics<parallel>, #tpu.dimension_semantics<parallel>, #tpu.dimension_semantics<arbitrary>], iteration_bounds = array<i64: 1, 1, 1>, scalar_prefetch = 0 : i64, scratch_operands = 1 : i64, tpu.core_type = #tpu.core_type<tc>, window_params = [{transform_indices = @transform_0, window_bounds = array<i64: 16, 32>}, {transform_indices = @transform_1, window_bounds = array<i64: 32, 96>}, {transform_indices = @transform_2, window_bounds = array<i64: 16, 96>}]} {
    %c0_i32 = arith.constant 0 : i32
    %0 = arith.cmpi eq, %arg2, %c0_i32 : i32
    %1 = arith.extui %0 : i1 to i32
    %c0_i32_0 = arith.constant 0 : i32
    %2 = arith.cmpi ne, %1, %c0_i32_0 : i32
    scf.if %2 {
      %cst_10 = arith.constant 0.000000e+00 : f32
      %12 = vector.broadcast %cst_10 : f32 to vector<16x96xf32>
      %c0_11 = arith.constant 0 : index
      %c0_12 = arith.constant 0 : index
      %13 = vector.load %arg6[%c0_11, %c0_12] : memref<16x96xf32, #tpu.memory_space<vmem>>, vector<16x96xf32>
      tpu.vector_store %arg6[%c0_11, %c0_12], %12 {strides = array<i32>} : memref<16x96xf32, #tpu.memory_space<vmem>>, vector<16x96xf32>,
    } else {
    }
    %c0 = arith.constant 0 : index
    %c0_1 = arith.constant 0 : index
    %3 = vector.load %arg6[%c0, %c0_1] : memref<16x96xf32, #tpu.memory_space<vmem>>, vector<16x96xf32>
    %c0_2 = arith.constant 0 : index
    %c0_3 = arith.constant 0 : index
    %4 = vector.load %arg3[%c0_2, %c0_3] : memref<16x32xf32, #tpu.memory_space<vmem>>, vector<16x32xf32>
    %c0_4 = arith.constant 0 : index
    %c0_5 = arith.constant 0 : index
    %5 = vector.load %arg4[%c0_4, %c0_5] : memref<32x96xf32, #tpu.memory_space<vmem>>, vector<32x96xf32>
    %cst = arith.constant dense<0.000000e+00> : vector<16x96xf32>
    %6 = tpu.matmul %4, %5, %cst {dimension_numbers = #tpu.dot_dimension_numbers<[1], [0], [0], [1], [0, 0, 1, 1], [], []>} : vector<16x32xf32>, vector<32x96xf32>, vector<16x96xf32> -> vector<16x96xf32>
    %7 = arith.addf %3, %6 : vector<16x96xf32>
    %c0_6 = arith.constant 0 : index
    %c0_7 = arith.constant 0 : index
    %8 = vector.load %arg6[%c0_6, %c0_7] : memref<16x96xf32, #tpu.memory_space<vmem>>, vector<16x96xf32>
    tpu.vector_store %arg6[%c0_6, %c0_7], %7 {strides = array<i32>} : memref<16x96xf32, #tpu.memory_space<vmem>>, vector<16x96xf32>,
    %c0_i32_8 = arith.constant 0 : i32
    %9 = arith.cmpi eq, %arg2, %c0_i32_8 : i32
    %10 = arith.extui %9 : i1 to i32
    %c0_i32_9 = arith.constant 0 : i32
    %11 = arith.cmpi ne, %10, %c0_i32_9 : i32
    scf.if %11 {
      %c0_10 = arith.constant 0 : index
      %c0_11 = arith.constant 0 : index
      %12 = vector.load %arg6[%c0_10, %c0_11] : memref<16x96xf32, #tpu.memory_space<vmem>>, vector<16x96xf32>
      %c0_12 = arith.constant 0 : index
      %c0_13 = arith.constant 0 : index
      %13 = vector.load %arg5[%c0_12, %c0_13] : memref<16x96xf32, #tpu.memory_space<vmem>>, vector<16x96xf32>
      tpu.vector_store %arg5[%c0_12, %c0_13], %12 {strides = array<i32>} : memref<16x96xf32, #tpu.memory_space<vmem>>, vector<16x96xf32>,
    } else {
    }
    return
  }
  func.func @transform_0(%arg0: i32, %arg1: i32, %arg2: i32) -> (i32, i32) {
    %c0_i32 = arith.constant 0 : i32
    return %arg0, %arg2 : i32, i32
  }
  func.func @transform_1(%arg0: i32, %arg1: i32, %arg2: i32) -> (i32, i32) {
    %c0_i32 = arith.constant 0 : i32
    return %arg2, %arg1 : i32, i32
  }
  func.func @transform_2(%arg0: i32, %arg1: i32, %arg2: i32) -> (i32, i32) {
    %c0_i32 = arith.constant 0 : i32
    return %arg0, %arg1 : i32, i32
  }
}

</mosaic_0001>

<bundles_post_ra>
// kernel: tpu_custom_call.1
= control target key start
LH: loop header
LB: loop body
LE: loop exit
PB: predicated region body
PF: predicated region fallthrough
CT: control target
= control target key end

     0   :  { %7 = vsyncpa [#allocation4], 0  ;;  %s344_s0 = inlined_call_operand.hbm [shape: f32[16,32], index: 0, kind: input, shape index: {}]   ;;  %s345_s1 = inlined_call_operand.hbm [shape: f32[32,96], index: 1, kind: input, shape index: {}]   ;;  %s346_s2 = inlined_call_operand.hbm [shape: f32[16,96], index: 2, kind: output, shape index: {}]  }
   0x1   :  { %8 = vsyncpa [#allocation7], 0 }
   0x2   :  { %9 = vsyncpa [#allocation5], 0  ;;  %s272_s9 = smov [#allocation3]   ;;  %s200_s13 = scalar_lea.hbm %s344_s0, 256 }
   0x3   :  { %s15_s10 = sshll.u32 %s272_s9, 4  ;;  %p201_p0 = scmp.ne.s32.totalorder %s344_s0, %s200_s13  ;;  %s16_s10 = int_to_ptr.vmem [resolvable:$true] %s15_s10 }
   0x4   :  { %p204_p1 = scmp.lt.u32.totalorder %s200_s13, %s344_s0 }
   0x6   :  { %p206_p2 = pnand %p204_p1, %p201_p0 }
   0x8   :  { %209 = shalt.err (!%p206_p2)
}
   0x9   :  { %s210_s18 = scalar_lea.vmem %s16_s10, 256  ;;  %p215_p4 = scmp.lt.s32.totalorder %s16_s10, %s16_s10 }
   0xa   :  { %p211_p3 = scmp.ne.s32.totalorder %s16_s10, %s210_s18  ;;  %p216_p5 = scmp.lt.s32.totalorder %s210_s18, %s210_s18 }
   0xc   :  { %p217_p6 = por %p216_p5, %p215_p4 }
   0xe   :  { %p218_p7 = pnand %p217_p6, %p211_p3 }
  0x10   :  { %221 = shalt.err (!%p218_p7)
}
  0x11   :  { %s273_s19 = smov 128   ;;  %s274_s20 = smov 8  }
  0x12   :  { %21 = dma.hbm_to_vmem [thread:$0]  %s344_s0, 256, %s16_s10, [#allocation4], %s273_s19, %s273_s19, %s274_s20  }
  0x13   :  { %s275_s23 = smov [#allocation6]   ;;  %s222_s27 = scalar_lea.hbm %s345_s1, 512 }
  0x14   :  { %s27_s24 = sshll.u32 %s275_s23, 4  ;;  %p223_p8 = scmp.ne.s32.totalorder %s345_s1, %s222_s27  ;;  %s28_s24 = int_to_ptr.vmem [resolvable:$true] %s27_s24 }
  0x15   :  { %p226_p9 = scmp.lt.u32.totalorder %s222_s27, %s345_s1 }
  0x17   :  { %p228_p10 = pnand %p226_p9, %p223_p8 }
  0x19   :  { %231 = shalt.err (!%p228_p10)
}
  0x1a   :  { %s232_s4 = scalar_lea.vmem %s28_s24, 512  ;;  %p237_p12 = scmp.lt.s32.totalorder %s28_s24, %s28_s24 }
  0x1b   :  { %p233_p11 = scmp.ne.s32.totalorder %s28_s24, %s232_s4  ;;  %p238_p13 = scmp.lt.s32.totalorder %s232_s4, %s232_s4 }
  0x1d   :  { %p239_p0 = por %p238_p13, %p237_p12 }
  0x1f   :  { %p240_p1 = pnand %p239_p0, %p233_p11 }
  0x21   :  { %243 = shalt.err (!%p240_p1)
}
  0x22   :  { %33 = dma.hbm_to_vmem [thread:$0]  %s345_s1, 512, %s28_s24, [#allocation7], %s273_s19, %s273_s19, %s274_s20  }
  0x23   :  { %266 = dma.done.wait [#allocation4], 256  }
  0x24   :  { %267 = vsyncadd [#allocation4], 4294967040 }
  0x25   :  { %268 = dma.done.wait [#allocation7], 512  }
  0x26   :  { %269 = vsyncadd [#allocation7], 4294966784  ;;  %vm44_vm0 = vcmask 785408   ;;  %v276_v0 = vmov 0.0   ;;  %vm55_vm1 = vcmask 261120   ;;  %v51_v1 = vld [vmem:[#allocation6] sm:$0xff] }
  0x27   :  { %46 = vst.msk [vmem:[#allocation2 + $0x8] sm:$0xff] %vm44_vm0, %v276_v0  ;;  %45 = vst.msk [vmem:[#allocation2] sm:$0xff] %vm44_vm0, %v276_v0  ;;  %v52_v2 = vld [vmem:[#allocation6 + $0x8] sm:$0xff]  ;;  %v53_v3 = vld [vmem:[#allocation6 + $0x10] sm:$0xff]  ;;  %s277_s1 = smov [#allocation8]  }
  0x28   :  { %v186_v4 = vpack.c.bf16 %v52_v2, %v51_v1  ;;  %v54_v5 = vld [vmem:[#allocation6 + $0x18] sm:$0xff]  ;;  %v49_v6 = vld [vmem:[#allocation3] sm:$0xff]  ;;  %s154_s6 = sshll.u32 %s277_s1, 4  ;;  %s155_s6 = int_to_ptr.vmem [resolvable:$true] %s154_s6 }
  0x29   :  { %v190_v7 = vpack.c.bf16 %v54_v5, %v53_v3  ;;  %183 = vmatprep.mubr.msk.f32.mxu0 %vm55_vm1, %v49_v6  ;;  %v50_v8 = vld [vmem:[#allocation3 + $0x8] sm:$0xff]  ;;  %s244_s7 = scalar_lea.vmem %s155_s6, 256  ;;  %p249_p3 = scmp.lt.s32.totalorder %s155_s6, %s155_s6 }
  0x2a   :  { %187 = vmatprep.subr.bf16.mxu0 %v186_v4  ;;  %p245_p2 = scmp.ne.s32.totalorder %s155_s6, %s244_s7  ;;  %p250_p4 = scmp.lt.s32.totalorder %s244_s7, %s244_s7 }
  0x2b   :  { %189 = vmatpush3.bf16.msra.mxu0 %v186_v4 }
  0x2c   :  { %191 = vmatprep.subr.bf16.mxu0 %v190_v7  ;;  %p251_p5 = por %p250_p4, %p249_p3 }
  0x2e   :  { %v48_v9 = vld [vmem:[#allocation2 + $0x8] sm:$0xff]  ;;  %v47_v10 = vld [vmem:[#allocation2] sm:$0xff]  ;;  %p252_p6 = pnand %p251_p5, %p245_p2 }
  0x2f   :  { %193 = vmatpush3.bf16.msra.mxu0 %v190_v7 }
  0x32   :  { %184 = vmatmul.mubr.msk.f32.vlgmr.msra.gmra.mrb[0].mxu0 %vm55_vm1, %v50_v8 }
 0x105   :  { %v185_v11 = vpop.f32.mrb[0].mxu0 }
 0x106   :  { %v138_v12 = vadd.f32 %v185_v11, %v48_v9  ;;  %v128_v13 = vpop.f32.mrb[1].mxu0 }
 0x107   :  { %v137_v14 = vadd.f32 %v128_v13, %v47_v10 }
 0x108   :  { %141 = vst.msk [vmem:[#allocation2 + $0x8] sm:$0xff] %vm44_vm0, %v138_v12 }
 0x109   :  { %140 = vst.msk [vmem:[#allocation2] sm:$0xff] %vm44_vm0, %v137_v14 }
 0x10f   :  { %v146_v15 = vld [vmem:[#allocation2 + $0x8] sm:$0xff] }
 0x110   :  { %v145_v16 = vld [vmem:[#allocation2] sm:$0xff]  ;;  %148 = vst.msk [vmem:[#allocation8 + $0x8] sm:$0xff] %vm44_vm0, %v146_v15 }
 0x111   :  { %147 = vst.msk [vmem:[#allocation8] sm:$0xff] %vm44_vm0, %v145_v16 }
 0x112   :  { %255 = shalt.err (!%p252_p6)
}
 0x113   :  { %s256_s10 = scalar_lea.hbm %s346_s2, 256 }
 0x114   :  { %p257_p7 = scmp.ne.s32.totalorder %s346_s2, %s256_s10  ;;  %p260_p8 = scmp.lt.u32.totalorder %s256_s10, %s346_s2 }
 0x116   :  { %p262_p9 = pnand %p260_p8, %p257_p7 }
 0x118   :  { %265 = shalt.err (!%p262_p9)
}
 0x119   :  { %160 = dma.vmem_to_hbm [thread:$0]  %s155_s6, 256, %s346_s2, [#allocation5], %s273_s19, %s273_s19, %s274_s20  }
 0x11a   :  { %270 = dma.done.wait [#allocation5], 256  }
 0x11b   :  { %271 = vsyncadd [#allocation5], 4294967040 }
 0x11c   :  { %164 = vsyncpa [#allocation4], 1 }
 0x11d   :  { %165 = vsyncpa [#allocation7], 1 }
 0x11e   :  { %166 = vsyncpa [#allocation5], 1 }

</bundles_post_ra>
